<compile_context>
chip_gen: v7x
topology: tpu7x:2x2x1
jax: 0.10.0
libtpu: 0.0.40
codegen_flags: <defaults>
</compile_context>

<pallas_src>
import jax
import jax.numpy as jnp
from jax.experimental import pallas as pl
from jax.experimental.pallas import tpu as pltpu

_MAX_INFLIGHT_DMAS = 8
_MIN_CHUNK_BYTES = 1 << 20  # keep each DMA descriptor >= ~1 MiB


def _make_dma_copy_kernel(starts, sizes, lead):
    """Build a kernel that copies x -> o via chunked HBM->HBM DMAs (axis 0)."""
    whole = len(starts) == 1 and starts[0] == 0 and sizes[0] == lead

    def kernel(x_hbm, o_hbm, sem):
        if whole:
            cp = pltpu.make_async_copy(x_hbm, o_hbm, sem.at[0])
            cp.start()
            cp.wait()
            return
        copies = []
        for i, (s, n) in enumerate(zip(starts, sizes)):
            cp = pltpu.make_async_copy(
                x_hbm.at[pl.ds(s, n)],
                o_hbm.at[pl.ds(s, n)],
                sem.at[i],
            )
            cp.start()
            copies.append(cp)
        for cp in copies:
            cp.wait()

    return kernel


def concatenate_module_forward(x):
    """ConcatenateModule.forward(x) -> x, via a Pallas HBM->HBM DMA copy."""
    orig_shape = x.shape
    total = x.size
    if total == 0:
        return x  # empty tensor: nothing to move

    # Collapse leading axes (free: TPU tiling only touches the last two dims)
    # so chunks can be sliced off the major axis without relayout copies.
    if x.ndim == 0:
        work = x.reshape(1)
    elif x.ndim <= 2:
        work = x
    else:
        work = x.reshape((-1,) + x.shape[-2:])

    lead = work.shape[0]
    itemsize = jnp.dtype(x.dtype).itemsize  # heuristic only; fine for >=1-byte dtypes
    total_bytes = total * itemsize

    # Only split into multiple in-flight DMAs when the transfer is large enough
    # to benefit and the leading axis sits above the tiled (sublane, lane) dims
    # (collapsed ndim >= 3), so chunk offsets need no alignment handling.
    if work.ndim >= 3:
        num_chunks = max(
            1, min(_MAX_INFLIGHT_DMAS, lead, total_bytes // _MIN_CHUNK_BYTES)
        )
    else:
        num_chunks = 1
        # TODO(synk): for huge 1-D/2-D inputs, chunk along sublane-aligned row
        # ranges to keep multiple DMA engines in flight.

    # Evenly split the leading axis into static chunks.
    base, rem = divmod(lead, num_chunks)
    starts, sizes = [], []
    off = 0
    for i in range(num_chunks):
        n = base + (1 if i < rem else 0)
        starts.append(off)
        sizes.append(n)
        off += n

    out = pl.pallas_call(
        _make_dma_copy_kernel(tuple(starts), tuple(sizes), lead),
        out_shape=jax.ShapeDtypeStruct(work.shape, work.dtype),
        in_specs=[pl.BlockSpec(memory_space=pl.ANY)],
        out_specs=pl.BlockSpec(memory_space=pl.ANY),
        scratch_shapes=[pltpu.SemaphoreType.DMA((num_chunks,))],
        cost_estimate=pl.CostEstimate(
            flops=0, transcendentals=0, bytes_accessed=2 * total_bytes
        ),
    )(work)

    return out.reshape(orig_shape)


if __name__ == "__main__":
    key = jax.random.PRNGKey(0)
    # NCHW input, matching the PyTorch module's convention.
    x = jax.random.normal(key, (2, 4, 16, 16), dtype=jnp.float32)

    y = concatenate_module_forward(x)
    jax.block_until_ready(y)

    assert y.shape == x.shape and y.dtype == x.dtype
    assert jnp.array_equal(y, x)
    print("KERNEL_OK")
</pallas_src>

<mosaic_0001>
module attributes {stable_mosaic.version = 11 : i64} {
  func.func @kernel(%arg0: memref<8x16x16xf32, #tpu.memory_space<any>>, %arg1: memref<8x16x16xf32, #tpu.memory_space<any>>, %arg2: memref<1x!tpu.dma_semaphore, #tpu.memory_space<semaphore_mem>>) attributes {dimension_semantics = [], scalar_prefetch = 0 : i64, scratch_operands = 1 : i64, tpu.core_type = #tpu.core_type<tc>} {
    %c0_i32 = arith.constant 0 : i32
    %0 = tpu.memref_slice %arg2[%c0_i32] : memref<1x!tpu.dma_semaphore, #tpu.memory_space<semaphore_mem>> -> memref<1x!tpu.dma_semaphore, #tpu.memory_space<semaphore_mem>>
    %1 = tpu.memref_squeeze %0 : memref<1x!tpu.dma_semaphore, #tpu.memory_space<semaphore_mem>> -> memref<!tpu.dma_semaphore, #tpu.memory_space<semaphore_mem>>
    tpu.enqueue_dma source(%arg0 : memref<8x16x16xf32, #tpu.memory_space<any>>) target(%arg1 : memref<8x16x16xf32, #tpu.memory_space<any>>) target_semaphore(%1 : memref<!tpu.dma_semaphore, #tpu.memory_space<semaphore_mem>>)
    %c0_i32_0 = arith.constant 0 : i32
    %2 = tpu.memref_slice %arg2[%c0_i32_0] : memref<1x!tpu.dma_semaphore, #tpu.memory_space<semaphore_mem>> -> memref<1x!tpu.dma_semaphore, #tpu.memory_space<semaphore_mem>>
    %3 = tpu.memref_squeeze %2 : memref<1x!tpu.dma_semaphore, #tpu.memory_space<semaphore_mem>> -> memref<!tpu.dma_semaphore, #tpu.memory_space<semaphore_mem>>
    tpu.wait_dma2 semaphore(%3 : memref<!tpu.dma_semaphore, #tpu.memory_space<semaphore_mem>>) src(%arg0 : memref<8x16x16xf32, #tpu.memory_space<any>>) dst(%arg1 : memref<8x16x16xf32, #tpu.memory_space<any>>)
    return
  }
}

</mosaic_0001>

<bundles_post_ra>
// kernel: tpu_custom_call.1
= control target key start
LH: loop header
LB: loop body
LE: loop exit
PB: predicated region body
PF: predicated region fallthrough
CT: control target
= control target key end

     0   :  { %s35_s6 = smov [#allocation2]   ;;  %s36_s7 = smov [#allocation3]   ;;  %s54_s0 = inlined_call_operand.hbm [shape: f32[8,16,16], index: 0, kind: input, shape index: {}]   ;;  %s55_s1 = inlined_call_operand.hbm [shape: f32[8,16,16], index: 1, kind: output, shape index: {}]  }
   0x1   :  { %s37_s8 = smov 0  }
   0x2   :  { %18 = dma.general %s54_s0, 2048, %s55_s1, %s35_s6, %s36_s7, [#allocation4], %s37_s8, 0  }
   0x3   :  { %33 = dma.done.wait [#allocation2], 2048 }
   0x4   :  { %34 = vsyncadd [#allocation2], 4294965248 }
   0x5   :  { %23 = vsyncmov [#allocation2] }
   0x8   :  { %s24_s13 = vpop.sfrf %23 }
   0x9   :  { %p29_p0 = scmp.ne.s32.totalorder %s24_s13, 0 }
   0xb   :  { %28 = shalt.err (%p29_p0)  }

</bundles_post_ra>
